<compile_context>
chip_gen: v5e
topology: v5e:2x2
jax: 0.10.0
libtpu: 0.0.40
codegen_flags: <defaults>
</compile_context>

<pallas_src>
import functools

import jax
import jax.numpy as jnp
import numpy as np
from jax.experimental import pallas as pl
from jax.experimental.pallas import tpu as pltpu

GAN_INPUT_SIZE = 24   # module-level constant in the original file; small demo value
ERROR_DIM = 8
HIDDEN = 64
MAX_TILE_B = 2048     # batch rows per grid step (sweep range 1024-4096)


def _leaky_relu(x, slope=0.2):
    return jnp.where(x > 0, x, slope * x)


def _round_up(x, m):
    return ((x + m - 1) // m) * m


def discriminator_kernel(x_ref, e_ref, w1a_ref, w1b_ref, b1_ref,
                         w2_ref, b2_ref, w3_ref, b3_ref, w4_ref, b4_ref,
                         o_ref):
    """Fused 4-layer MLP over one batch tile (batch-major layout).

    x_ref : (tile_b, GAN_INPUT_SIZE)    e_ref : (tile_b, ERROR_DIM)
    w*_ref: (in, out) weights (pre-transposed in the wrapper), VMEM-resident
    b*_ref: (1, out) f32 biases         b4_ref: (1, 1) scalar bias in SMEM
    o_ref : (tile_b, 1)
    """
    cdt = w2_ref.dtype  # matmul operand dtype: f32 by default, bf16 if enabled

    # Layer 1: concat([x, e]) @ W1.T  ==  x @ W1a.T + e @ W1b.T  (no concat copy)
    h = (jnp.dot(x_ref[...].astype(cdt), w1a_ref[...],
                 preferred_element_type=jnp.float32)
         + jnp.dot(e_ref[...].astype(cdt), w1b_ref[...],
                   preferred_element_type=jnp.float32)
         + b1_ref[...])
    h = _leaky_relu(h)

    h = jnp.dot(h.astype(cdt), w2_ref[...],
                preferred_element_type=jnp.float32) + b2_ref[...]
    h = _leaky_relu(h)

    h = jnp.dot(h.astype(cdt), w3_ref[...],
                preferred_element_type=jnp.float32) + b3_ref[...]
    h = _leaky_relu(h)

    # Final 64 -> 1 layer (tiny); scalar bias from SMEM.
    out = jnp.dot(h.astype(cdt), w4_ref[...],
                  preferred_element_type=jnp.float32) + b4_ref[0, 0]
    o_ref[...] = out.astype(o_ref.dtype)


def make_params(key, gan_input_size=GAN_INPUT_SIZE, error_dim=ERROR_DIM,
                hidden=HIDDEN):
    """PyTorch-style nn.Linear init (uniform +-1/sqrt(fan_in)).
    Weights stored (out_features, in_features); biases as (out_features,)."""
    dims = [(hidden, gan_input_size + error_dim),
            (hidden, hidden),
            (hidden, hidden),
            (1, hidden)]
    params = []
    for (fan_out, fan_in) in dims:
        key, kw, kb = jax.random.split(key, 3)
        bound = 1.0 / np.sqrt(fan_in)
        w = jax.random.uniform(kw, (fan_out, fan_in), jnp.float32, -bound, bound)
        b = jax.random.uniform(kb, (fan_out,), jnp.float32, -bound, bound)
        params.append((w, b))
    return params


def _const_spec(shape):
    # Full-extent, grid-invariant block: DMA'd once, VMEM-resident across steps.
    zeros = (0,) * len(shape)
    return pl.BlockSpec(shape, lambda i, _z=zeros: _z)


def _select_tile_b(batch, max_tile_b):
    if batch <= 128:
        return 128
    # Keep >= 2 grid steps when the batch allows it so v7x's two TensorCores
    # both get work under dimension_semantics=("parallel",); no-op on v5e/v6e.
    two_way = _round_up((batch + 1) // 2, 128)
    return max(128, min(max_tile_b, two_way))


@functools.partial(jax.jit, static_argnames=("max_tile_b", "use_bf16_matmul"))
def discriminator_forward(x_input, error, params, *, max_tile_b=MAX_TILE_B,
                          use_bf16_matmul=False):
    (w1, b1), (w2, b2), (w3, b3), (w4, b4) = params
    B, din_x = x_input.shape
    de = error.shape[1]

    cdt = jnp.bfloat16 if use_bf16_matmul else jnp.float32

    # Weight prep (tiny, done once under jit): split W1 so the kernel never
    # needs a concatenated input; transpose all weights to (in, out).
    w1a_t = w1[:, :din_x].T.astype(cdt)            # (Dx, 64)
    w1b_t = w1[:, din_x:].T.astype(cdt)            # (De, 64)
    w2_t = w2.T.astype(cdt)                        # (64, 64)
    w3_t = w3.T.astype(cdt)                        # (64, 64)
    w4_t = w4.T.astype(cdt)                        # (64, 1)
    b1_r = b1.reshape(1, -1).astype(jnp.float32)   # (1, 64)
    b2_r = b2.reshape(1, -1).astype(jnp.float32)
    b3_r = b3.reshape(1, -1).astype(jnp.float32)
    b4_s = b4.reshape(1, 1).astype(jnp.float32)    # scalar -> SMEM

    tile_b = _select_tile_b(B, max_tile_b)

    # Small-batch path only (B < 128): pad rows up to one tile so block shapes
    # never exceed the array extent.  For B >= 128 there is NO padding and NO
    # copy pre-pass; the ragged last tile is handled by Pallas (its extra rows
    # only produce discarded output rows).
    if B < tile_b:
        pad = tile_b - B
        x_in = jnp.pad(x_input, ((0, pad), (0, 0)))
        e_in = jnp.pad(error, ((0, pad), (0, 0)))
        b_eff = tile_b
    else:
        x_in, e_in = x_input, error
        b_eff = B
    num_tiles = (b_eff + tile_b - 1) // tile_b

    out = pl.pallas_call(
        discriminator_kernel,
        out_shape=jax.ShapeDtypeStruct((b_eff, 1), jnp.float32),
        grid=(num_tiles,),
        in_specs=[
            pl.BlockSpec((tile_b, din_x), lambda i: (i, 0)),  # x rows (contiguous DMA)
            pl.BlockSpec((tile_b, de), lambda i: (i, 0)),     # error rows
            _const_spec(w1a_t.shape), _const_spec(w1b_t.shape), _const_spec(b1_r.shape),
            _const_spec(w2_t.shape), _const_spec(b2_r.shape),
            _const_spec(w3_t.shape), _const_spec(b3_r.shape),
            _const_spec(w4_t.shape),
            pl.BlockSpec(memory_space=pltpu.MemorySpace.SMEM),  # b4 scalar
        ],
        out_specs=pl.BlockSpec((tile_b, 1), lambda i: (i, 0)),
        compiler_params=pltpu.CompilerParams(
            dimension_semantics=("parallel",),       # shard batch over v7x's 2 TCs
            vmem_limit_bytes=32 * 1024 * 1024,       # clear v5e's 16 MiB default
        ),
    )(x_in, e_in, w1a_t, w1b_t, b1_r, w2_t, b2_r, w3_t, b3_r, w4_t, b4_s)

    return out[:B]


def discriminator_ref(x_input, error, params):
    x = jnp.concatenate([x_input, error], axis=1)
    h = x
    for i, (w, b) in enumerate(params):
        h = h @ w.T + b
        if i < len(params) - 1:
            h = _leaky_relu(h)
    return h


if __name__ == "__main__":
    key = jax.random.PRNGKey(0)
    kx, ke, kp, kx2, ke2 = jax.random.split(key, 5)
    params = make_params(kp)

    # Small shapes consistent with the module.
    B = 8
    x_input = jax.random.normal(kx, (B, GAN_INPUT_SIZE), jnp.float32)
    error = jax.random.normal(ke, (B, ERROR_DIM), jnp.float32)

    out = jax.block_until_ready(discriminator_forward(x_input, error, params))
    ref = discriminator_ref(x_input, error, params)
    np.testing.assert_allclose(np.asarray(out), np.asarray(ref),
                               rtol=1e-5, atol=1e-5)
    assert out.shape == (B, 1)

    # Larger, non-multiple-of-tile batch exercises the multi-tile + ragged-edge
    # path (2 grid steps -> both TensorCores on v7x).
    B2 = 600
    x2 = jax.random.normal(kx2, (B2, GAN_INPUT_SIZE), jnp.float32)
    e2 = jax.random.normal(ke2, (B2, ERROR_DIM), jnp.float32)
    out2 = jax.block_until_ready(discriminator_forward(x2, e2, params))
    ref2 = discriminator_ref(x2, e2, params)
    np.testing.assert_allclose(np.asarray(out2), np.asarray(ref2),
                               rtol=1e-5, atol=1e-5)
    assert out2.shape == (B2, 1)

    print("KERNEL_OK")
</pallas_src>

<mosaic_0001>
module attributes {stable_mosaic.version = 11 : i64} {
  func.func @discriminator_kernel(%arg0: i32, %arg1: memref<128x24xf32, #tpu.memory_space<vmem>>, %arg2: memref<128x8xf32, #tpu.memory_space<vmem>>, %arg3: memref<24x64xf32, #tpu.memory_space<vmem>>, %arg4: memref<8x64xf32, #tpu.memory_space<vmem>>, %arg5: memref<1x64xf32, #tpu.memory_space<vmem>>, %arg6: memref<64x64xf32, #tpu.memory_space<vmem>>, %arg7: memref<1x64xf32, #tpu.memory_space<vmem>>, %arg8: memref<64x64xf32, #tpu.memory_space<vmem>>, %arg9: memref<1x64xf32, #tpu.memory_space<vmem>>, %arg10: memref<64x1xf32, #tpu.memory_space<vmem>>, %arg11: memref<1x1xf32, #tpu.memory_space<smem>>, %arg12: memref<128x1xf32, #tpu.memory_space<vmem>>) attributes {dimension_semantics = [#tpu.dimension_semantics<parallel>], iteration_bounds = array<i64: 1>, scalar_prefetch = 0 : i64, scratch_operands = 0 : i64, tpu.core_type = #tpu.core_type<tc>, window_params = [{transform_indices = @transform_0, window_bounds = array<i64: 128, 24>}, {transform_indices = @transform_1, window_bounds = array<i64: 128, 8>}, {pipeline_mode = #tpu.pipeline_mode<synchronous>, transform_indices = @transform_2, window_bounds = array<i64: 24, 64>}, {pipeline_mode = #tpu.pipeline_mode<synchronous>, transform_indices = @transform_3, window_bounds = array<i64: 8, 64>}, {pipeline_mode = #tpu.pipeline_mode<synchronous>, transform_indices = @transform_4, window_bounds = array<i64: 1, 64>}, {pipeline_mode = #tpu.pipeline_mode<synchronous>, transform_indices = @transform_5, window_bounds = array<i64: 64, 64>}, {pipeline_mode = #tpu.pipeline_mode<synchronous>, transform_indices = @transform_6, window_bounds = array<i64: 1, 64>}, {pipeline_mode = #tpu.pipeline_mode<synchronous>, transform_indices = @transform_7, window_bounds = array<i64: 64, 64>}, {pipeline_mode = #tpu.pipeline_mode<synchronous>, transform_indices = @transform_8, window_bounds = array<i64: 1, 64>}, {pipeline_mode = #tpu.pipeline_mode<synchronous>, transform_indices = @transform_9, window_bounds = array<i64: 64, 1>}, {transform_indices = @transform_10, window_bounds = array<i64: 1, 1>}, {transform_indices = @transform_11, window_bounds = array<i64: 128, 1>}]} {
    %c0 = arith.constant 0 : index
    %c0_0 = arith.constant 0 : index
    %0 = vector.load %arg1[%c0, %c0_0] : memref<128x24xf32, #tpu.memory_space<vmem>>, vector<128x24xf32>
    %c0_1 = arith.constant 0 : index
    %c0_2 = arith.constant 0 : index
    %1 = vector.load %arg3[%c0_1, %c0_2] : memref<24x64xf32, #tpu.memory_space<vmem>>, vector<24x64xf32>
    %cst = arith.constant dense<0.000000e+00> : vector<128x64xf32>
    %2 = tpu.matmul %0, %1, %cst {dimension_numbers = #tpu.dot_dimension_numbers<[1], [0], [0], [1], [0, 0, 1, 1], [], []>} : vector<128x24xf32>, vector<24x64xf32>, vector<128x64xf32> -> vector<128x64xf32>
    %c0_3 = arith.constant 0 : index
    %c0_4 = arith.constant 0 : index
    %3 = vector.load %arg2[%c0_3, %c0_4] : memref<128x8xf32, #tpu.memory_space<vmem>>, vector<128x8xf32>
    %c0_5 = arith.constant 0 : index
    %c0_6 = arith.constant 0 : index
    %4 = vector.load %arg4[%c0_5, %c0_6] : memref<8x64xf32, #tpu.memory_space<vmem>>, vector<8x64xf32>
    %cst_7 = arith.constant dense<0.000000e+00> : vector<128x64xf32>
    %5 = tpu.matmul %3, %4, %cst_7 {dimension_numbers = #tpu.dot_dimension_numbers<[1], [0], [0], [1], [0, 0, 1, 1], [], []>} : vector<128x8xf32>, vector<8x64xf32>, vector<128x64xf32> -> vector<128x64xf32>
    %6 = arith.addf %2, %5 : vector<128x64xf32>
    %c0_8 = arith.constant 0 : index
    %c0_9 = arith.constant 0 : index
    %7 = vector.load %arg5[%c0_8, %c0_9] : memref<1x64xf32, #tpu.memory_space<vmem>>, vector<1x64xf32>
    %8 = vector.broadcast %7 : vector<1x64xf32> to vector<128x64xf32>
    %9 = arith.addf %6, %8 : vector<128x64xf32>
    %cst_10 = arith.constant 0.000000e+00 : f32
    %10 = vector.broadcast %cst_10 : f32 to vector<128x64xf32>
    %11 = arith.cmpf ogt, %9, %10 : vector<128x64xf32>
    %cst_11 = arith.constant 2.000000e-01 : f32
    %12 = vector.broadcast %cst_11 : f32 to vector<128x64xf32>
    %13 = arith.mulf %12, %9 : vector<128x64xf32>
    %14 = arith.select %11, %9, %13 : vector<128x64xi1>, vector<128x64xf32>
    %c0_12 = arith.constant 0 : index
    %c0_13 = arith.constant 0 : index
    %15 = vector.load %arg6[%c0_12, %c0_13] : memref<64x64xf32, #tpu.memory_space<vmem>>, vector<64x64xf32>
    %cst_14 = arith.constant dense<0.000000e+00> : vector<128x64xf32>
    %16 = tpu.matmul %14, %15, %cst_14 {dimension_numbers = #tpu.dot_dimension_numbers<[1], [0], [0], [1], [0, 0, 1, 1], [], []>} : vector<128x64xf32>, vector<64x64xf32>, vector<128x64xf32> -> vector<128x64xf32>
    %c0_15 = arith.constant 0 : index
    %c0_16 = arith.constant 0 : index
    %17 = vector.load %arg7[%c0_15, %c0_16] : memref<1x64xf32, #tpu.memory_space<vmem>>, vector<1x64xf32>
    %18 = vector.broadcast %17 : vector<1x64xf32> to vector<128x64xf32>
    %19 = arith.addf %16, %18 : vector<128x64xf32>
    %cst_17 = arith.constant 0.000000e+00 : f32
    %20 = vector.broadcast %cst_17 : f32 to vector<128x64xf32>
    %21 = arith.cmpf ogt, %19, %20 : vector<128x64xf32>
    %cst_18 = arith.constant 2.000000e-01 : f32
    %22 = vector.broadcast %cst_18 : f32 to vector<128x64xf32>
    %23 = arith.mulf %22, %19 : vector<128x64xf32>
    %24 = arith.select %21, %19, %23 : vector<128x64xi1>, vector<128x64xf32>
    %c0_19 = arith.constant 0 : index
    %c0_20 = arith.constant 0 : index
    %25 = vector.load %arg8[%c0_19, %c0_20] : memref<64x64xf32, #tpu.memory_space<vmem>>, vector<64x64xf32>
    %cst_21 = arith.constant dense<0.000000e+00> : vector<128x64xf32>
    %26 = tpu.matmul %24, %25, %cst_21 {dimension_numbers = #tpu.dot_dimension_numbers<[1], [0], [0], [1], [0, 0, 1, 1], [], []>} : vector<128x64xf32>, vector<64x64xf32>, vector<128x64xf32> -> vector<128x64xf32>
    %c0_22 = arith.constant 0 : index
    %c0_23 = arith.constant 0 : index
    %27 = vector.load %arg9[%c0_22, %c0_23] : memref<1x64xf32, #tpu.memory_space<vmem>>, vector<1x64xf32>
    %28 = vector.broadcast %27 : vector<1x64xf32> to vector<128x64xf32>
    %29 = arith.addf %26, %28 : vector<128x64xf32>
    %cst_24 = arith.constant 0.000000e+00 : f32
    %30 = vector.broadcast %cst_24 : f32 to vector<128x64xf32>
    %31 = arith.cmpf ogt, %29, %30 : vector<128x64xf32>
    %cst_25 = arith.constant 2.000000e-01 : f32
    %32 = vector.broadcast %cst_25 : f32 to vector<128x64xf32>
    %33 = arith.mulf %32, %29 : vector<128x64xf32>
    %34 = arith.select %31, %29, %33 : vector<128x64xi1>, vector<128x64xf32>
    %c0_26 = arith.constant 0 : index
    %c0_27 = arith.constant 0 : index
    %35 = vector.load %arg10[%c0_26, %c0_27] : memref<64x1xf32, #tpu.memory_space<vmem>>, vector<64x1xf32>
    %cst_28 = arith.constant dense<0.000000e+00> : vector<128x1xf32>
    %36 = tpu.matmul %34, %35, %cst_28 {dimension_numbers = #tpu.dot_dimension_numbers<[1], [0], [0], [1], [0, 0, 1, 1], [], []>} : vector<128x64xf32>, vector<64x1xf32>, vector<128x1xf32> -> vector<128x1xf32>
    %c0_29 = arith.constant 0 : index
    %c0_30 = arith.constant 0 : index
    %37 = memref.load %arg11[%c0_29, %c0_30] : memref<1x1xf32, #tpu.memory_space<smem>>
    %38 = vector.broadcast %37 : f32 to vector<128x1xf32>
    %39 = arith.addf %36, %38 : vector<128x1xf32>
    %c0_31 = arith.constant 0 : index
    %c0_32 = arith.constant 0 : index
    %40 = vector.load %arg12[%c0_31, %c0_32] : memref<128x1xf32, #tpu.memory_space<vmem>>, vector<128x1xf32>
    tpu.vector_store %arg12[%c0_31, %c0_32], %39 {strides = array<i32>} : memref<128x1xf32, #tpu.memory_space<vmem>>, vector<128x1xf32>,
    return
  }
  func.func @transform_0(%arg0: i32) -> (i32, i32) {
    %c0_i32 = arith.constant 0 : i32
    %c0_i32_0 = arith.constant 0 : i32
    return %arg0, %c0_i32 : i32, i32
  }
  func.func @transform_1(%arg0: i32) -> (i32, i32) {
    %c0_i32 = arith.constant 0 : i32
    %c0_i32_0 = arith.constant 0 : i32
    return %arg0, %c0_i32 : i32, i32
  }
  func.func @transform_2(%arg0: i32) -> (i32, i32) {
    %c0_i32 = arith.constant 0 : i32
    %c0_i32_0 = arith.constant 0 : i32
    %c0_i32_1 = arith.constant 0 : i32
    return %c0_i32, %c0_i32_0 : i32, i32
  }
  func.func @transform_3(%arg0: i32) -> (i32, i32) {
    %c0_i32 = arith.constant 0 : i32
    %c0_i32_0 = arith.constant 0 : i32
    %c0_i32_1 = arith.constant 0 : i32
    return %c0_i32, %c0_i32_0 : i32, i32
  }
  func.func @transform_4(%arg0: i32) -> (i32, i32) {
    %c0_i32 = arith.constant 0 : i32
    %c0_i32_0 = arith.constant 0 : i32
    %c0_i32_1 = arith.constant 0 : i32
    return %c0_i32, %c0_i32_0 : i32, i32
  }
  func.func @transform_5(%arg0: i32) -> (i32, i32) {
    %c0_i32 = arith.constant 0 : i32
    %c0_i32_0 = arith.constant 0 : i32
    %c0_i32_1 = arith.constant 0 : i32
    return %c0_i32, %c0_i32_0 : i32, i32
  }
  func.func @transform_6(%arg0: i32) -> (i32, i32) {
    %c0_i32 = arith.constant 0 : i32
    %c0_i32_0 = arith.constant 0 : i32
    %c0_i32_1 = arith.constant 0 : i32
    return %c0_i32, %c0_i32_0 : i32, i32
  }
  func.func @transform_7(%arg0: i32) -> (i32, i32) {
    %c0_i32 = arith.constant 0 : i32
    %c0_i32_0 = arith.constant 0 : i32
    %c0_i32_1 = arith.constant 0 : i32
    return %c0_i32, %c0_i32_0 : i32, i32
  }
  func.func @transform_8(%arg0: i32) -> (i32, i32) {
    %c0_i32 = arith.constant 0 : i32
    %c0_i32_0 = arith.constant 0 : i32
    %c0_i32_1 = arith.constant 0 : i32
    return %c0_i32, %c0_i32_0 : i32, i32
  }
  func.func @transform_9(%arg0: i32) -> (i32, i32) {
    %c0_i32 = arith.constant 0 : i32
    %c0_i32_0 = arith.constant 0 : i32
    %c0_i32_1 = arith.constant 0 : i32
    return %c0_i32, %c0_i32_0 : i32, i32
  }
  func.func @transform_10(%arg0: i32) -> (i32, i32) {
    %c0_i32 = arith.constant 0 : i32
    %c0_i32_0 = arith.constant 0 : i32
    %c0_i32_1 = arith.constant 0 : i32
    return %c0_i32, %c0_i32_0 : i32, i32
  }
  func.func @transform_11(%arg0: i32) -> (i32, i32) {
    %c0_i32 = arith.constant 0 : i32
    %c0_i32_0 = arith.constant 0 : i32
    return %arg0, %c0_i32 : i32, i32
  }
}

</mosaic_0001>

<bundles_post_ra>
// kernel: discriminator_forward.1
= control target key start
LH: loop header
LB: loop body
LE: loop exit
PB: predicated region body
PF: predicated region fallthrough
CT: control target
= control target key end

     0   :  { %vm75_vm0 = vcmask 64512   ;;  %vm189_vm1 = vcmask 195584   ;;  %vm383_vm3 = vcmask 523264   ;;  %s1421_s3 = inlined_call_operand.vmem [shape: f32[8,64], index: 3, kind: input, shape index: {}]   ;;  %s1422_s1 = inlined_call_operand.vmem [shape: f32[128,8], index: 1, kind: input, shape index: {}]   ;;  %s1423_s2 = inlined_call_operand.vmem [shape: f32[24,64], index: 2, kind: input, shape index: {}]   ;;  %s1424_s4 = inlined_call_operand.vmem [shape: f32[1,64], index: 4, kind: input, shape index: {}]   ;;  %s1425_s0 = inlined_call_operand.vmem [shape: f32[128,24], index: 0, kind: input, shape index: {}]   ;;  %s1426_s5 = inlined_call_operand.vmem [shape: f32[64,64], index: 5, kind: input, shape index: {}]   ;;  %s1427_s6 = inlined_call_operand.vmem [shape: f32[1,64], index: 6, kind: input, shape index: {}]   ;;  %s1428_s7 = inlined_call_operand.vmem [shape: f32[64,64], index: 7, kind: input, shape index: {}]   ;;  %s1429_s8 = inlined_call_operand.vmem [shape: f32[1,64], index: 8, kind: input, shape index: {}]   ;;  %s1430_s9 = inlined_call_operand.vmem [shape: f32[64,1], index: 9, kind: input, shape index: {}]   ;;  %s1431_s10 = inlined_call_operand.<no memory space> [shape: f32[1,1], index: 10, kind: input, shape index: {}]   ;;  %s1432_s11 = inlined_call_operand.vmem [shape: f32[128,1], index: 11, kind: output, shape index: {}]  }
   0x1   :  { %v74_v0 = vld [vmem:[%s1421_s3] sm:$0xff]  ;;  %v63_v1 = vld [vmem:[%s1422_s1 + $0x28] sm:$0xff]  ;;  %v57_v2 = vld [vmem:[%s1423_s2 + $0x10] sm:$0xff] }
   0x2   :  { %942 = vmatpush.msra.mxu1 %v74_v0  ;;  %139 = vmatpush.msra.mxu0 %v74_v0  ;;  %v56_v3 = vld [vmem:[%s1423_s2 + $0x8] sm:$0xff]  ;;  %v58_v4 = vld [vmem:[%s1422_s1] sm:$0xff]  ;;  %v64_v6 = vld [vmem:[%s1422_s1 + $0x30] sm:$0xff] }
   0x3   :  { %867 = vmatmul.msk.f32.vlgmr.msra.gmra.mxu1 %vm75_vm0, %v63_v1  ;;  %943 = vmatpush.msra.mxu2 %v74_v0  ;;  %v55_v5 = vld [vmem:[%s1423_s2] sm:$0xff]  ;;  %v59_v7 = vld [vmem:[%s1422_s1 + $0x8] sm:$0xff]  ;;  %v65_v8 = vld [vmem:[%s1422_s1 + $0x38] sm:$0xff] }
   0x4   :  { %251 = vmatpush.msrb.mxu1 %v57_v2  ;;  %944 = vmatpush.msra.mxu3 %v74_v0  ;;  %v60_v9 = vld [vmem:[%s1422_s1 + $0x10] sm:$0xff]  ;;  %v66_v10 = vld [vmem:[%s1422_s1 + $0x40] sm:$0xff]  ;;  %v61_v11 = vld [vmem:[%s1422_s1 + $0x18] sm:$0xff] }
   0x5   :  { %862 = vmatmul.msk.f32.vlgmr.msra.gmra.mxu0 %vm75_vm0, %v58_v4  ;;  %v67_v12 = vld [vmem:[%s1422_s1 + $0x48] sm:$0xff]  ;;  %v62_v13 = vld [vmem:[%s1422_s1 + $0x20] sm:$0xff]  ;;  %v41_v16 = vld [vmem:[%s1425_s0 + $0x10] sm:$0xff] }
   0x6   :  { %252 = vmatpush.msrb.mxu1 %v56_v3  ;;  %v39_v14 = vld [vmem:[%s1425_s0] sm:$0xff]  ;;  %v40_v15 = vld [vmem:[%s1425_s0 + $0x8] sm:$0xff]  ;;  %v42_v17 = vld [vmem:[%s1425_s0 + $0x18] sm:$0xff] }
   0x7   :  { %v43_v18 = vld [vmem:[%s1425_s0 + $0x20] sm:$0xff]  ;;  %v44_v19 = vld [vmem:[%s1425_s0 + $0x28] sm:$0xff]  ;;  %v68_v20 = vld [vmem:[%s1422_s1 + $0x50] sm:$0xff] }
   0x8   :  { %253 = vmatpush.msrb.mxu1 %v55_v5  ;;  %872 = vmatmul.msk.f32.vlgmr.msra.gmra.mxu2 %vm75_vm0, %v68_v20  ;;  %v45_v21 = vld [vmem:[%s1425_s0 + $0x30] sm:$0xff]  ;;  %v69_v22 = vld [vmem:[%s1422_s1 + $0x58] sm:$0xff]  ;;  %v70_v24 = vld [vmem:[%s1422_s1 + $0x60] sm:$0xff] }
   0x9   :  { %v46_v23 = vld [vmem:[%s1425_s0 + $0x38] sm:$0xff]  ;;  %874 = vmatmul.msk.f32.vlgmr.msra.gmra.mxu3 %vm75_vm0, %v70_v24  ;;  %v47_v25 = vld [vmem:[%s1425_s0 + $0x40] sm:$0xff]  ;;  %v71_v26 = vld [vmem:[%s1422_s1 + $0x68] sm:$0xff] }
   0xa   :  { %v48_v27 = vld [vmem:[%s1425_s0 + $0x48] sm:$0xff]  ;;  %v72_v28 = vld [vmem:[%s1422_s1 + $0x70] sm:$0xff]  ;;  %v73_v30 = vld [vmem:[%s1422_s1 + $0x78] sm:$0xff] }
   0xb   :  { %868 = vmatmul.msk.f32.gmra.mxu1 %vm75_vm0, %v64_v6  ;;  %v49_v29 = vld [vmem:[%s1425_s0 + $0x50] sm:$0xff]  ;;  %v50_v32 = vld [vmem:[%s1425_s0 + $0x58] sm:$0xff]  ;;  %v376_v35 = vld [vmem:[%s1426_s5 + $0x28] sm:$0xff] }
   0xc   :  { %v378_v33 = vld [vmem:[%s1426_s5 + $0x38] sm:$0xff]  ;;  %v377_v34 = vld [vmem:[%s1426_s5 + $0x30] sm:$0xff]  ;;  %v375_v36 = vld [vmem:[%s1426_s5 + $0x20] sm:$0xff] }
   0xd   :  { %863 = vmatmul.msk.f32.gmra.mxu0 %vm75_vm0, %v59_v7  ;;  %440 = vmatpush.msrb.mxu2 %v378_v33  ;;  %v51_v38 = vld [vmem:[%s1425_s0 + $0x60] sm:$0xff]  ;;  %v374_v39 = vld [vmem:[%s1426_s5 + $0x18] sm:$0xff]  ;;  %v373_v40 = vld [vmem:[%s1426_s5 + $0x10] sm:$0xff] }
   0xe   :  { %v372_v41 = vld [vmem:[%s1426_s5 + $0x8] sm:$0xff]  ;;  %v371_v42 = vld [vmem:[%s1426_s5] sm:$0xff]  ;;  %v53_v46 = vld [vmem:[%s1425_s0 + $0x70] sm:$0xff] }
   0xf   :  { %441 = vmatpush.msrb.mxu2 %v377_v34  ;;  %v52_v44 = vld [vmem:[%s1425_s0 + $0x68] sm:$0xff]  ;;  %v54_v49 = vld [vmem:[%s1425_s0 + $0x78] sm:$0xff]  ;;  %v1193_v50 = vld [vmem:[%s1424_s4] ss:$0 sm:$0xff] }
  0x10   :  { %873 = vmatmul.msk.f32.gmra.mxu2 %vm75_vm0, %v69_v22 }
  0x11   :  { %875 = vmatmul.msk.f32.gmra.mxu3 %vm75_vm0, %v71_v26  ;;  %442 = vmatpush.msrb.mxu2 %v376_v35 }
  0x13   :  { %869 = vmatmul.msk.f32.gmra.mxu1 %vm75_vm0, %v65_v8  ;;  %443 = vmatpush.msrb.mxu2 %v375_v36 }
  0x15   :  { %864 = vmatmul.msk.f32.gmra.mxu0 %vm75_vm0, %v60_v9  ;;  %444 = vmatpush.msrb.mxu2 %v374_v39 }
  0x17   :  { %445 = vmatpush.msrb.mxu2 %v373_v40 }
  0x19   :  { %876 = vmatmul.msk.f32.gmra.mxu3 %vm75_vm0, %v72_v28  ;;  %446 = vmatpush.msrb.mxu2 %v372_v41 }
  0x1b   :  { %870 = vmatmul.msk.f32.gmra.mxu1 %vm75_vm0, %v66_v10  ;;  %447 = vmatpush.msrb.mxu2 %v371_v42 }
  0x1d   :  { %865 = vmatmul.msk.f32.gmra.mxu0 %vm75_vm0, %v61_v11 }
  0x21   :  { %877 = vmatmul.msk.f32.gmra.mxu3 %vm75_vm0, %v73_v30 }
  0x23   :  { %871 = vmatmul.msk.f32.gmra.mxu1 %vm75_vm0, %v67_v12 }
  0x25   :  { %866 = vmatmul.msk.f32.gmra.mxu0 %vm75_vm0, %v62_v13 }
  0x2b   :  { %878 = vmatmul.msk.f32.vlgmr.msrb.gmra.mxu1 %vm189_vm1, %v39_v14 }
  0x33   :  { %879 = vmatmul.msk.f32.gmra.mxu1 %vm189_vm1, %v40_v15 }
  0x3b   :  { %880 = vmatmul.msk.f32.gmra.mxu1 %vm189_vm1, %v41_v16 }
  0x43   :  { %881 = vmatmul.msk.f32.gmra.mxu1 %vm189_vm1, %v42_v17 }
  0x4b   :  { %882 = vmatmul.msk.f32.gmra.mxu1 %vm189_vm1, %v43_v18 }
  0x53   :  { %883 = vmatmul.msk.f32.gmra.mxu1 %vm189_vm1, %v44_v19 }
  0x5b   :  { %884 = vmatmul.msk.f32.gmra.mxu1 %vm189_vm1, %v45_v21 }
  0x63   :  { %885 = vmatmul.msk.f32.gmra.mxu1 %vm189_vm1, %v46_v23 }
  0x6b   :  { %886 = vmatmul.msk.f32.gmra.mxu1 %vm189_vm1, %v47_v25 }
  0x73   :  { %887 = vmatmul.msk.f32.gmra.mxu1 %vm189_vm1, %v48_v27 }
  0x7b   :  { %888 = vmatmul.msk.f32.gmra.mxu1 %vm189_vm1, %v49_v29 }
  0x80   :  { %v1136_v31 = vpop.f32.mrf.mxu1 }
  0x82   :  { %v141_v47 = vpop.f32.mrf.mxu0 }
  0x83   :  { %889 = vmatmul.msk.f32.gmra.mxu1 %vm189_vm1, %v50_v32 }
  0x88   :  { %v1154_v37 = vpop.f32.mrf.mxu1 }
  0x8a   :  { %v144_v52 = vpop.f32.mrf.mxu0 }
  0x8b   :  { %890 = vmatmul.msk.f32.gmra.mxu1 %vm189_vm1, %v51_v38  ;;  %v171_v39 = vpop.f32.mrf.mxu2 }
  0x90   :  { %v1172_v43 = vpop.f32.mrf.mxu1 }
  0x92   :  { %v147_v59 = vpop.f32.mrf.mxu0 }
  0x93   :  { %891 = vmatmul.msk.f32.gmra.mxu1 %vm189_vm1, %v52_v44 }
  0x98   :  { %v1178_v45 = vpop.f32.mrf.mxu1 }
  0x9a   :  { %v150_v2 = vpop.f32.mrf.mxu0 }
  0x9b   :  { %892 = vmatmul.msk.f32.gmra.mxu1 %vm189_vm1, %v53_v46  ;;  %v551_v46 = vld [vmem:[%s1428_s7 + $0x30] sm:$0xff] }
  0xa0   :  { %v1184_v48 = vpop.f32.mrf.mxu1 }
  0xa2   :  { %v153_v9 = vpop.f32.mrf.mxu0 }
  0xa3   :  { %893 = vmatmul.msk.f32.gmra.mxu1 %vm189_vm1, %v54_v49 }
  0xa8   :  { %v255_v51 = vpop.f32.mrf.mxu1 }
  0xa9   :  { %v256_v53 = vadd.f32 %v255_v51, %v141_v47 }
  0xab   :  { %v307_v54 = vadd.f32 %v1193_v50, %v256_v53 }
  0xad   :  { %v339_v55 = vmul.f32 0.2, %v307_v54  ;;  %vm323_vm2 = vcmp.gt.f32.partialorder %v307_v54, 0.0 }
  0xaf   :  { %v355_v56 = vsel %vm323_vm2, %v307_v54, %v339_v55  ;;  %v550_v55 = vld [vmem:[%s1428_s7 + $0x28] sm:$0xff] }
  0xb0   :  { %v258_v57 = vpop.f32.mrf.mxu1  ;;  %894 = vmatmul.msk.f32.vlgmr.msrb.gmra.mxu2 %vm383_vm3, %v355_v56  ;;  %v549_v56 = vld [vmem:[%s1428_s7 + $0x20] sm:$0xff] }
  0xb1   :  { %v259_v58 = vadd.f32 %v258_v57, %v144_v52  ;;  %v177_v52 = vpop.f32.mrf.mxu3 }
  0xb3   :  { %v308_v60 = vadd.f32 %v1193_v50, %v259_v58 }
  0xb5   :  { %vm324_vm4 = vcmp.gt.f32.partialorder %v308_v60, 0.0  ;;  %v340_v61 = vmul.f32 0.2, %v308_v60 }
  0xb7   :  { %v356_v62 = vsel %vm324_vm4, %v308_v60, %v340_v61  ;;  %v548_v60 = vld [vmem:[%s1428_s7 + $0x18] sm:$0xff]  ;;  %v547_v61 = vld [vmem:[%s1428_s7 + $0x10] sm:$0xff] }
  0xb8   :  { %v261_v63 = vpop.f32.mrf.mxu1  ;;  %895 = vmatmul.msk.f32.gmra.mxu2 %vm383_vm3, %v356_v62 }
  0xb9   :  { %v262_v0 = vadd.f32 %v261_v63, %v147_v59  ;;  %v180_v63 = vpop.f32.mrf.mxu3 }
  0xbb   :  { %v309_v1 = vadd.f32 %v1193_v50, %v262_v0  ;;  %v546_v0 = vld [vmem:[%s1428_s7 + $0x8] sm:$0xff] }
  0xbd   :  { %vm325_vm5 = vcmp.gt.f32.partialorder %v309_v1, 0.0  ;;  %v341_v3 = vmul.f32 0.2, %v309_v1 }
  0xbf   :  { %v357_v4 = vsel %vm325_vm5, %v309_v1, %v341_v3 }
  0xc0   :  { %v264_v5 = vpop.f32.mrf.mxu1  ;;  %896 = vmatmul.msk.f32.gmra.mxu2 %vm383_vm3, %v357_v4 }
  0xc1   :  { %v265_v6 = vadd.f32 %v264_v5, %v150_v2 }
  0xc3   :  { %v310_v7 = vadd.f32 %v1193_v50, %v265_v6 }
  0xc5   :  { %vm326_vm6 = vcmp.gt.f32.partialorder %v310_v7, 0.0  ;;  %v342_v8 = vmul.f32 0.2, %v310_v7 }
  0xc7   :  { %v358_v10 = vsel %vm326_vm6, %v310_v7, %v342_v8  ;;  %v183_v7 = vpop.f32.mrf.mxu3 }
  0xc8   :  { %v267_v11 = vpop.f32.mrf.mxu1  ;;  %897 = vmatmul.msk.f32.gmra.mxu2 %vm383_vm3, %v358_v10 }
  0xc9   :  { %v268_v12 = vadd.f32 %v267_v11, %v153_v9  ;;  %v545_v9 = vld [vmem:[%s1428_s7] sm:$0xff] }
  0xcb   :  { %v311_v13 = vadd.f32 %v1193_v50, %v268_v12 }
  0xcd   :  { %vm327_vm7 = vcmp.gt.f32.partialorder %v311_v13, 0.0  ;;  %v343_v14 = vmul.f32 0.2, %v311_v13 }
  0xcf   :  { %v359_v15 = vsel %vm327_vm7, %v311_v13, %v343_v14 }
  0xd0   :  { %v270_v16 = vpop.f32.mrf.mxu1  ;;  %898 = vmatmul.msk.f32.gmra.mxu2 %vm383_vm3, %v359_v15  ;;  %v186_v15 = vpop.f32.mrf.mxu3 }
  0xd1   :  { %v271_v17 = vadd.f32 %v270_v16, %v1136_v31 }
  0xd3   :  { %v312_v18 = vadd.f32 %v1193_v50, %v271_v17 }
  0xd5   :  { %vm328_vm8 = vcmp.gt.f32.partialorder %v312_v18, 0.0  ;;  %v344_v19 = vmul.f32 0.2, %v312_v18 }
  0xd7   :  { %v360_v20 = vsel %vm328_vm8, %v312_v18, %v344_v19 }
  0xd8   :  { %v273_v21 = vpop.f32.mrf.mxu1  ;;  %899 = vmatmul.msk.f32.gmra.mxu2 %vm383_vm3, %v360_v20 }
  0xd9   :  { %v274_v22 = vadd.f32 %v273_v21, %v1154_v37 }
  0xdb   :  { %v313_v23 = vadd.f32 %v1193_v50, %v274_v22  ;;  %v1259_v22 = vld [vmem:[%s1427_s6] ss:$0 sm:$0xff] }
  0xdd   :  { %vm329_vm9 = vcmp.gt.f32.partialorder %v313_v23, 0.0  ;;  %v345_v24 = vmul.f32 0.2, %v313_v23 }
  0xdf   :  { %v361_v25 = vsel %vm329_vm9, %v313_v23, %v345_v24 }
  0xe0   :  { %v276_v26 = vpop.f32.mrf.mxu1  ;;  %900 = vmatmul.msk.f32.gmra.mxu2 %vm383_vm3, %v361_v25 }
  0xe1   :  { %v277_v27 = vadd.f32 %v276_v26, %v1172_v43 }
  0xe3   :  { %v314_v28 = vadd.f32 %v1193_v50, %v277_v27 }
  0xe5   :  { %vm330_vm10 = vcmp.gt.f32.partialorder %v314_v28, 0.0  ;;  %v346_v29 = vmul.f32 0.2, %v314_v28 }
  0xe7   :  { %v362_v30 = vsel %vm330_vm10, %v314_v28, %v346_v29 }
  0xe8   :  { %v279_v31 = vpop.f32.mrf.mxu1  ;;  %901 = vmatmul.msk.f32.gmra.mxu2 %vm383_vm3, %v362_v30 }
  0xe9   :  { %v280_v32 = vadd.f32 %v279_v31, %v1178_v45  ;;  %v552_v45 = vld [vmem:[%s1428_s7 + $0x38] sm:$0xff] }
  0xea   :  { %613 = vmatpush.msrb.mxu3 %v552_v45 }
  0xeb   :  { %v315_v33 = vadd.f32 %v1193_v50, %v280_v32 }
  0xec   :  { %614 = vmatpush.msrb.mxu3 %v551_v46 }
  0xed   :  { %vm331_vm11 = vcmp.gt.f32.partialorder %v315_v33, 0.0  ;;  %v347_v34 = vmul.f32 0.2, %v315_v33 }
  0xee   :  { %615 = vmatpush.msrb.mxu3 %v550_v55 }
  0xef   :  { %v363_v35 = vsel %vm331_vm11, %v315_v33, %v347_v34 }
  0xf0   :  { %v282_v36 = vpop.f32.mrf.mxu1  ;;  %902 = vmatmul.msk.f32.gmra.mxu2 %vm383_vm3, %v363_v35  ;;  %616 = vmatpush.msrb.mxu3 %v549_v56 }
  0xf1   :  { %v283_v37 = vadd.f32 %v282_v36, %v1184_v48  ;;  %v174_v48 = vpop.f32.mrf.mxu2 }
  0xf2   :  { %617 = vmatpush.msrb.mxu3 %v548_v60 }
  0xf3   :  { %v316_v38 = vadd.f32 %v1193_v50, %v283_v37 }
  0xf4   :  { %618 = vmatpush.msrb.mxu3 %v547_v61 }
  0xf5   :  { %vm332_vm12 = vcmp.gt.f32.partialorder %v316_v38, 0.0  ;;  %v348_v40 = vmul.f32 0.2, %v316_v38 }
  0xf6   :  { %619 = vmatpush.msrb.mxu3 %v546_v0 }
  0xf7   :  { %v364_v41 = vsel %vm332_vm12, %v316_v38, %v348_v40 }
  0xf8   :  { %v285_v42 = vpop.f32.mrf.mxu1  ;;  %903 = vmatmul.msk.f32.gmra.mxu2 %vm383_vm3, %v364_v41  ;;  %620 = vmatpush.msrb.mxu3 %v545_v9  ;;  %v723_v9 = vld [vmem:[%s1430_s9 + $0x28] sm:$0xff] }
  0xf9   :  { %v286_v43 = vadd.f32 %v285_v42, %v171_v39 }
  0xfb   :  { %v317_v44 = vadd.f32 %v1193_v50, %v286_v43 }
  0xfd   :  { %vm333_vm13 = vcmp.gt.f32.partialorder %v317_v44, 0.0  ;;  %v349_v47 = vmul.f32 0.2, %v317_v44 }
  0xff   :  { %v365_v49 = vsel %vm333_vm13, %v317_v44, %v349_v47 }
 0x100   :  { %v288_v51 = vpop.f32.mrf.mxu1  ;;  %904 = vmatmul.msk.f32.gmra.mxu2 %vm383_vm3, %v365_v49 }
 0x101   :  { %v289_v53 = vadd.f32 %v288_v51, %v174_v48 }
 0x103   :  { %v318_v54 = vadd.f32 %v1193_v50, %v289_v53 }
 0x105   :  { %vm334_vm14 = vcmp.gt.f32.partialorder %v318_v54, 0.0  ;;  %v350_v57 = vmul.f32 0.2, %v318_v54 }
 0x107   :  { %v366_v58 = vsel %vm334_vm14, %v318_v54, %v350_v57 }
 0x108   :  { %v291_v59 = vpop.f32.mrf.mxu1  ;;  %905 = vmatmul.msk.f32.gmra.mxu2 %vm383_vm3, %v366_v58 }
 0x109   :  { %v292_v62 = vadd.f32 %v291_v59, %v177_v52 }
 0x10b   :  { %v319_v1 = vadd.f32 %v1193_v50, %v292_v62 }
 0x10d   :  { %vm335_vm15 = vcmp.gt.f32.partialorder %v319_v1, 0.0  ;;  %v351_v2 = vmul.f32 0.2, %v319_v1 }
 0x10f   :  { %v367_v3 = vsel %vm335_vm15, %v319_v1, %v351_v2  ;;  %v725_v2 = vld [vmem:[%s1430_s9 + $0x38] sm:$0xff] }
 0x110   :  { %v294_v4 = vpop.f32.mrf.mxu1  ;;  %906 = vmatmul.msk.f32.gmra.mxu2 %vm383_vm3, %v367_v3  ;;  %784 = vmatpush.msrb.mxu0 %v725_v2 }
 0x111   :  { %v295_v5 = vadd.f32 %v294_v4, %v180_v63  ;;  %945 = vmatpush.msra.mxu2 %v725_v2 }
 0x113   :  { %v320_v6 = vadd.f32 %v1193_v50, %v295_v5 }
 0x115   :  { %vm336_vm0 = vcmp.gt.f32.partialorder %v320_v6, 0.0  ;;  %v352_v8 = vmul.f32 0.2, %v320_v6 }
 0x117   :  { %v368_v10 = vsel %vm336_vm0, %v320_v6, %v352_v8 }
 0x118   :  { %v297_v11 = vpop.f32.mrf.mxu1  ;;  %907 = vmatmul.msk.f32.gmra.mxu2 %vm383_vm3, %v368_v10  ;;  %v722_v10 = vld [vmem:[%s1430_s9 + $0x20] sm:$0xff] }
 0x119   :  { %v298_v12 = vadd.f32 %v297_v11, %v183_v7  ;;  %v724_v7 = vld [vmem:[%s1430_s9 + $0x30] sm:$0xff] }
 0x11a   :  { %785 = vmatpush.msrb.mxu0 %v724_v7  ;;  %946 = vmatpush.msra.mxu2 %v724_v7 }
 0x11b   :  { %v321_v13 = vadd.f32 %v1193_v50, %v298_v12  ;;  %v721_v12 = vld [vmem:[%s1430_s9 + $0x18] sm:$0xff] }
 0x11c   :  { %786 = vmatpush.msrb.mxu0 %v723_v9  ;;  %947 = vmatpush.msra.mxu2 %v723_v9 }
 0x11d   :  { %vm337_vm1 = vcmp.gt.f32.partialorder %v321_v13, 0.0  ;;  %v353_v14 = vmul.f32 0.2, %v321_v13 }
 0x11e   :  { %787 = vmatpush.msrb.mxu0 %v722_v10  ;;  %948 = vmatpush.msra.mxu2 %v722_v10 }
 0x11f   :  { %v369_v16 = vsel %vm337_vm1, %v321_v13, %v353_v14 }
 0x120   :  { %v300_v17 = vpop.f32.mrf.mxu1  ;;  %908 = vmatmul.msk.f32.gmra.mxu2 %vm383_vm3, %v369_v16  ;;  %788 = vmatpush.msrb.mxu0 %v721_v12 }
 0x121   :  { %v301_v18 = vadd.f32 %v300_v17, %v186_v15  ;;  %949 = vmatpush.msra.mxu2 %v721_v12 }
 0x123   :  { %v322_v19 = vadd.f32 %v1193_v50, %v301_v18  ;;  %v720_v18 = vld [vmem:[%s1430_s9 + $0x10] sm:$0xff] }
 0x124   :  { %789 = vmatpush.msrb.mxu0 %v720_v18  ;;  %950 = vmatpush.msra.mxu2 %v720_v18 }
 0x125   :  { %vm338_vm2 = vcmp.gt.f32.partialorder %v322_v19, 0.0  ;;  %v354_v20 = vmul.f32 0.2, %v322_v19 }
 0x127   :  { %v370_v21 = vsel %vm338_vm2, %v322_v19, %v354_v20  ;;  %v719_v20 = vld [vmem:[%s1430_s9 + $0x8] sm:$0xff] }
 0x128   :  { %909 = vmatmul.msk.f32.gmra.mxu2 %vm383_vm3, %v370_v21  ;;  %790 = vmatpush.msrb.mxu0 %v719_v20  ;;  %v718_v21 = vld [vmem:[%s1430_s9] sm:$0xff] }
 0x129   :  { %951 = vmatpush.msra.mxu2 %v719_v20 }
 0x12a   :  { %791 = vmatpush.msrb.mxu0 %v718_v21 }
 0x12b   :  { %952 = vmatpush.msra.mxu2 %v718_v21 }
 0x133   :  { %v449_v23 = vpop.f32.mrf.mxu2 }
 0x134   :  { %v450_v24 = vadd.f32 %v1259_v22, %v449_v23 }
 0x136   :  { %vm497_vm4 = vcmp.gt.f32.partialorder %v450_v24, 0.0  ;;  %v513_v25 = vmul.f32 0.2, %v450_v24 }
 0x138   :  { %v529_v26 = vsel %vm497_vm4, %v450_v24, %v513_v25 }
 0x139   :  { %910 = vmatmul.msk.f32.vlgmr.msrb.gmra.mxu3 %vm383_vm3, %v529_v26 }
 0x13b   :  { %v452_v27 = vpop.f32.mrf.mxu2 }
 0x13c   :  { %v453_v50 = vadd.f32 %v1259_v22, %v452_v27 }
 0x13e   :  { %v514_v28 = vmul.f32 0.2, %v453_v50  ;;  %vm498_vm5 = vcmp.gt.f32.partialorder %v453_v50, 0.0 }
 0x140   :  { %v530_v29 = vsel %vm498_vm5, %v453_v50, %v514_v28 }
 0x141   :  { %911 = vmatmul.msk.f32.gmra.mxu3 %vm383_vm3, %v530_v29 }
 0x143   :  { %v455_v30 = vpop.f32.mrf.mxu2 }
 0x144   :  { %v456_v31 = vadd.f32 %v1259_v22, %v455_v30 }
 0x146   :  { %v515_v32 = vmul.f32 0.2, %v456_v31  ;;  %vm499_vm6 = vcmp.gt.f32.partialorder %v456_v31, 0.0 }
 0x148   :  { %v531_v33 = vsel %vm499_vm6, %v456_v31, %v515_v32  ;;  %v1320_v31 = vld [vmem:[%s1429_s8] ss:$0 sm:$0xff] }
 0x149   :  { %912 = vmatmul.msk.f32.gmra.mxu3 %vm383_vm3, %v531_v33 }
 0x14b   :  { %v458_v34 = vpop.f32.mrf.mxu2 }
 0x14c   :  { %v459_v35 = vadd.f32 %v1259_v22, %v458_v34 }
 0x14e   :  { %v516_v36 = vmul.f32 0.2, %v459_v35  ;;  %vm500_vm7 = vcmp.gt.f32.partialorder %v459_v35, 0.0 }
 0x150   :  { %v532_v37 = vsel %vm500_vm7, %v459_v35, %v516_v36 }
 0x151   :  { %913 = vmatmul.msk.f32.gmra.mxu3 %vm383_vm3, %v532_v37 }
 0x153   :  { %v461_v38 = vpop.f32.mrf.mxu2 }
 0x154   :  { %v462_v39 = vadd.f32 %v1259_v22, %v461_v38 }
 0x156   :  { %v517_v40 = vmul.f32 0.2, %v462_v39  ;;  %vm501_vm8 = vcmp.gt.f32.partialorder %v462_v39, 0.0 }
 0x158   :  { %v533_v41 = vsel %vm501_vm8, %v462_v39, %v517_v40 }
 0x159   :  { %914 = vmatmul.msk.f32.gmra.mxu3 %vm383_vm3, %v533_v41 }
 0x15b   :  { %v464_v42 = vpop.f32.mrf.mxu2 }
 0x15c   :  { %v465_v43 = vadd.f32 %v1259_v22, %v464_v42 }
 0x15e   :  { %v518_v44 = vmul.f32 0.2, %v465_v43  ;;  %vm502_vm9 = vcmp.gt.f32.partialorder %v465_v43, 0.0 }
 0x160   :  { %v534_v45 = vsel %vm502_vm9, %v465_v43, %v518_v44 }
 0x161   :  { %915 = vmatmul.msk.f32.gmra.mxu3 %vm383_vm3, %v534_v45 }
 0x163   :  { %v467_v46 = vpop.f32.mrf.mxu2 }
 0x164   :  { %v468_v47 = vadd.f32 %v1259_v22, %v467_v46 }
 0x166   :  { %v519_v48 = vmul.f32 0.2, %v468_v47  ;;  %vm503_vm10 = vcmp.gt.f32.partialorder %v468_v47, 0.0 }
 0x168   :  { %v535_v49 = vsel %vm503_vm10, %v468_v47, %v519_v48 }
 0x169   :  { %916 = vmatmul.msk.f32.gmra.mxu3 %vm383_vm3, %v535_v49 }
 0x16b   :  { %v470_v51 = vpop.f32.mrf.mxu2 }
 0x16c   :  { %v471_v52 = vadd.f32 %v1259_v22, %v470_v51 }
 0x16e   :  { %v520_v53 = vmul.f32 0.2, %v471_v52  ;;  %vm504_vm11 = vcmp.gt.f32.partialorder %v471_v52, 0.0 }
 0x170   :  { %v536_v54 = vsel %vm504_vm11, %v471_v52, %v520_v53 }
 0x171   :  { %917 = vmatmul.msk.f32.gmra.mxu3 %vm383_vm3, %v536_v54 }
 0x173   :  { %v473_v55 = vpop.f32.mrf.mxu2 }
 0x174   :  { %v474_v56 = vadd.f32 %v1259_v22, %v473_v55 }
 0x176   :  { %v521_v57 = vmul.f32 0.2, %v474_v56  ;;  %vm505_vm12 = vcmp.gt.f32.partialorder %v474_v56, 0.0 }
 0x178   :  { %v537_v58 = vsel %vm505_vm12, %v474_v56, %v521_v57 }
 0x179   :  { %918 = vmatmul.msk.f32.gmra.mxu3 %vm383_vm3, %v537_v58 }
 0x17b   :  { %v476_v59 = vpop.f32.mrf.mxu2 }
 0x17c   :  { %v477_v60 = vadd.f32 %v1259_v22, %v476_v59 }
 0x17e   :  { %v522_v61 = vmul.f32 0.2, %v477_v60  ;;  %vm506_vm13 = vcmp.gt.f32.partialorder %v477_v60, 0.0 }
 0x180   :  { %v538_v62 = vsel %vm506_vm13, %v477_v60, %v522_v61 }
 0x181   :  { %919 = vmatmul.msk.f32.gmra.mxu3 %vm383_vm3, %v538_v62 }
 0x183   :  { %v479_v63 = vpop.f32.mrf.mxu2 }
 0x184   :  { %v480_v0 = vadd.f32 %v1259_v22, %v479_v63 }
 0x186   :  { %v523_v1 = vmul.f32 0.2, %v480_v0  ;;  %vm507_vm14 = vcmp.gt.f32.partialorder %v480_v0, 0.0 }
 0x188   :  { %v539_v3 = vsel %vm507_vm14, %v480_v0, %v523_v1 }
 0x189   :  { %920 = vmatmul.msk.f32.gmra.mxu3 %vm383_vm3, %v539_v3 }
 0x18b   :  { %v482_v4 = vpop.f32.mrf.mxu2 }
 0x18c   :  { %v483_v5 = vadd.f32 %v1259_v22, %v482_v4 }
 0x18e   :  { %v524_v6 = vmul.f32 0.2, %v483_v5  ;;  %vm508_vm15 = vcmp.gt.f32.partialorder %v483_v5, 0.0 }
 0x190   :  { %v540_v8 = vsel %vm508_vm15, %v483_v5, %v524_v6 }
 0x191   :  { %921 = vmatmul.msk.f32.gmra.mxu3 %vm383_vm3, %v540_v8 }
 0x193   :  { %v485_v11 = vpop.f32.mrf.mxu2 }
 0x194   :  { %v486_v13 = vadd.f32 %v1259_v22, %v485_v11 }
 0x196   :  { %v525_v14 = vmul.f32 0.2, %v486_v13  ;;  %vm509_vm0 = vcmp.gt.f32.partialorder %v486_v13, 0.0 }
 0x198   :  { %v541_v15 = vsel %vm509_vm0, %v486_v13, %v525_v14 }
 0x199   :  { %922 = vmatmul.msk.f32.gmra.mxu3 %vm383_vm3, %v541_v15 }
 0x19b   :  { %v488_v16 = vpop.f32.mrf.mxu2 }
 0x19c   :  { %v489_v17 = vadd.f32 %v1259_v22, %v488_v16 }
 0x19e   :  { %v526_v19 = vmul.f32 0.2, %v489_v17  ;;  %vm510_vm1 = vcmp.gt.f32.partialorder %v489_v17, 0.0 }
 0x1a0   :  { %v542_v23 = vsel %vm510_vm1, %v489_v17, %v526_v19 }
 0x1a1   :  { %923 = vmatmul.msk.f32.gmra.mxu3 %vm383_vm3, %v542_v23 }
 0x1a3   :  { %v491_v24 = vpop.f32.mrf.mxu2 }
 0x1a4   :  { %v492_v25 = vadd.f32 %v1259_v22, %v491_v24 }
 0x1a6   :  { %v527_v26 = vmul.f32 0.2, %v492_v25  ;;  %vm511_vm2 = vcmp.gt.f32.partialorder %v492_v25, 0.0 }
 0x1a8   :  { %v543_v27 = vsel %vm511_vm2, %v492_v25, %v527_v26 }
 0x1a9   :  { %924 = vmatmul.msk.f32.gmra.mxu3 %vm383_vm3, %v543_v27 }
 0x1ab   :  { %v494_v50 = vpop.f32.mrf.mxu2 }
 0x1ac   :  { %v495_v28 = vadd.f32 %v1259_v22, %v494_v50 }
 0x1ae   :  { %v528_v29 = vmul.f32 0.2, %v495_v28  ;;  %vm512_vm4 = vcmp.gt.f32.partialorder %v495_v28, 0.0 }
 0x1b0   :  { %v544_v30 = vsel %vm512_vm4, %v495_v28, %v528_v29 }
 0x1b1   :  { %925 = vmatmul.msk.f32.gmra.mxu3 %vm383_vm3, %v544_v30 }
 0x1bc   :  { %v622_v32 = vpop.f32.mrf.mxu3 }
 0x1bd   :  { %v623_v33 = vadd.f32 %v1320_v31, %v622_v32 }
 0x1bf   :  { %vm670_vm5 = vcmp.gt.f32.partialorder %v623_v33, 0.0  ;;  %v686_v34 = vmul.f32 0.2, %v623_v33 }
 0x1c1   :  { %v702_v35 = vsel %vm670_vm5, %v623_v33, %v686_v34  ;;  %v727_v33 = vstv %s1431_s10 }
 0x1c2   :  { %926 = vmatmul.msk.f32.vlgmr.msrb.gmra.mxu0 %vm383_vm3, %v702_v35 }
 0x1c4   :  { %v625_v36 = vpop.f32.mrf.mxu3 }
 0x1c5   :  { %v626_v22 = vadd.f32 %v1320_v31, %v625_v36 }
 0x1c7   :  { %v687_v37 = vmul.f32 0.2, %v626_v22  ;;  %vm671_vm6 = vcmp.gt.f32.partialorder %v626_v22, 0.0 }
 0x1c9   :  { %v703_v38 = vsel %vm671_vm6, %v626_v22, %v687_v37  ;;  %vm841_vm6 = vcmask 7168  }
 0x1ca   :  { %927 = vmatmul.msk.f32.gmra.mxu0 %vm383_vm3, %v703_v38 }
 0x1cc   :  { %v628_v39 = vpop.f32.mrf.mxu3 }
 0x1cd   :  { %v629_v40 = vadd.f32 %v1320_v31, %v628_v39 }
 0x1cf   :  { %v688_v41 = vmul.f32 0.2, %v629_v40  ;;  %vm672_vm7 = vcmp.gt.f32.partialorder %v629_v40, 0.0 }
 0x1d1   :  { %v704_v42 = vsel %vm672_vm7, %v629_v40, %v688_v41 }
 0x1d2   :  { %928 = vmatmul.msk.f32.gmra.mxu0 %vm383_vm3, %v704_v42 }
 0x1d4   :  { %v631_v43 = vpop.f32.mrf.mxu3 }
 0x1d5   :  { %v632_v44 = vadd.f32 %v1320_v31, %v631_v43 }
 0x1d7   :  { %v689_v45 = vmul.f32 0.2, %v632_v44  ;;  %vm673_vm8 = vcmp.gt.f32.partialorder %v632_v44, 0.0 }
 0x1d9   :  { %v705_v46 = vsel %vm673_vm8, %v632_v44, %v689_v45 }
 0x1da   :  { %929 = vmatmul.msk.f32.gmra.mxu0 %vm383_vm3, %v705_v46 }
 0x1dc   :  { %v634_v47 = vpop.f32.mrf.mxu3 }
 0x1dd   :  { %v635_v48 = vadd.f32 %v1320_v31, %v634_v47 }
 0x1df   :  { %v690_v49 = vmul.f32 0.2, %v635_v48  ;;  %vm674_vm9 = vcmp.gt.f32.partialorder %v635_v48, 0.0 }
 0x1e1   :  { %v706_v51 = vsel %vm674_vm9, %v635_v48, %v690_v49 }
 0x1e2   :  { %930 = vmatmul.msk.f32.gmra.mxu0 %vm383_vm3, %v706_v51 }
 0x1e4   :  { %v637_v52 = vpop.f32.mrf.mxu3 }
 0x1e5   :  { %v638_v53 = vadd.f32 %v1320_v31, %v637_v52 }
 0x1e7   :  { %v691_v54 = vmul.f32 0.2, %v638_v53  ;;  %vm675_vm10 = vcmp.gt.f32.partialorder %v638_v53, 0.0 }
 0x1e9   :  { %v707_v55 = vsel %vm675_vm10, %v638_v53, %v691_v54 }
 0x1ea   :  { %931 = vmatmul.msk.f32.gmra.mxu0 %vm383_vm3, %v707_v55 }
 0x1ec   :  { %v640_v56 = vpop.f32.mrf.mxu3 }
 0x1ed   :  { %v641_v57 = vadd.f32 %v1320_v31, %v640_v56 }
 0x1ef   :  { %v692_v58 = vmul.f32 0.2, %v641_v57  ;;  %vm676_vm11 = vcmp.gt.f32.partialorder %v641_v57, 0.0 }
 0x1f1   :  { %v708_v59 = vsel %vm676_vm11, %v641_v57, %v692_v58 }
 0x1f2   :  { %932 = vmatmul.msk.f32.gmra.mxu0 %vm383_vm3, %v708_v59 }
 0x1f4   :  { %v643_v60 = vpop.f32.mrf.mxu3 }
 0x1f5   :  { %v644_v61 = vadd.f32 %v1320_v31, %v643_v60 }
 0x1f7   :  { %v693_v62 = vmul.f32 0.2, %v644_v61  ;;  %vm677_vm12 = vcmp.gt.f32.partialorder %v644_v61, 0.0 }
 0x1f9   :  { %v709_v63 = vsel %vm677_vm12, %v644_v61, %v693_v62 }
 0x1fa   :  { %933 = vmatmul.msk.f32.gmra.mxu0 %vm383_vm3, %v709_v63 }
 0x1fc   :  { %v646_v0 = vpop.f32.mrf.mxu3 }
 0x1fd   :  { %v647_v1 = vadd.f32 %v1320_v31, %v646_v0 }
 0x1ff   :  { %v694_v2 = vmul.f32 0.2, %v647_v1  ;;  %vm678_vm13 = vcmp.gt.f32.partialorder %v647_v1, 0.0 }
 0x201   :  { %v710_v3 = vsel %vm678_vm13, %v647_v1, %v694_v2 }
 0x202   :  { %934 = vmatmul.msk.f32.gmra.mxu0 %vm383_vm3, %v710_v3 }
 0x204   :  { %v649_v4 = vpop.f32.mrf.mxu3 }
 0x205   :  { %v650_v5 = vadd.f32 %v1320_v31, %v649_v4 }
 0x207   :  { %v695_v6 = vmul.f32 0.2, %v650_v5  ;;  %vm679_vm14 = vcmp.gt.f32.partialorder %v650_v5, 0.0 }
 0x209   :  { %v711_v7 = vsel %vm679_vm14, %v650_v5, %v695_v6 }
 0x20a   :  { %935 = vmatmul.msk.f32.gmra.mxu0 %vm383_vm3, %v711_v7 }
 0x20c   :  { %v652_v8 = vpop.f32.mrf.mxu3 }
 0x20d   :  { %v653_v9 = vadd.f32 %v1320_v31, %v652_v8 }
 0x20f   :  { %v696_v10 = vmul.f32 0.2, %v653_v9  ;;  %vm680_vm15 = vcmp.gt.f32.partialorder %v653_v9, 0.0 }
 0x211   :  { %v712_v11 = vsel %vm680_vm15, %v653_v9, %v696_v10 }
 0x212   :  { %936 = vmatmul.msk.f32.gmra.mxu0 %vm383_vm3, %v712_v11 }
 0x214   :  { %v655_v12 = vpop.f32.mrf.mxu3 }
 0x215   :  { %v656_v13 = vadd.f32 %v1320_v31, %v655_v12 }
 0x217   :  { %v697_v14 = vmul.f32 0.2, %v656_v13  ;;  %vm681_vm0 = vcmp.gt.f32.partialorder %v656_v13, 0.0 }
 0x219   :  { %v713_v15 = vsel %vm681_vm0, %v656_v13, %v697_v14 }
 0x21a   :  { %937 = vmatmul.msk.f32.gmra.mxu0 %vm383_vm3, %v713_v15 }
 0x21c   :  { %v658_v16 = vpop.f32.mrf.mxu3 }
 0x21d   :  { %v659_v17 = vadd.f32 %v1320_v31, %v658_v16 }
 0x21f   :  { %v698_v18 = vmul.f32 0.2, %v659_v17  ;;  %vm682_vm1 = vcmp.gt.f32.partialorder %v659_v17, 0.0 }
 0x221   :  { %v714_v19 = vsel %vm682_vm1, %v659_v17, %v698_v18 }
 0x222   :  { %938 = vmatmul.msk.f32.gmra.mxu0 %vm383_vm3, %v714_v19 }
 0x224   :  { %v661_v20 = vpop.f32.mrf.mxu3 }
 0x225   :  { %v662_v21 = vadd.f32 %v1320_v31, %v661_v20 }
 0x227   :  { %v699_v23 = vmul.f32 0.2, %v662_v21  ;;  %vm683_vm2 = vcmp.gt.f32.partialorder %v662_v21, 0.0 }
 0x229   :  { %v715_v24 = vsel %vm683_vm2, %v662_v21, %v699_v23 }
 0x22a   :  { %939 = vmatmul.msk.f32.gmra.mxu0 %vm383_vm3, %v715_v24 }
 0x22c   :  { %v664_v25 = vpop.f32.mrf.mxu3 }
 0x22d   :  { %v665_v26 = vadd.f32 %v1320_v31, %v664_v25 }
 0x22f   :  { %v700_v27 = vmul.f32 0.2, %v665_v26  ;;  %vm684_vm4 = vcmp.gt.f32.partialorder %v665_v26, 0.0 }
 0x231   :  { %v716_v50 = vsel %vm684_vm4, %v665_v26, %v700_v27 }
 0x232   :  { %940 = vmatmul.msk.f32.gmra.mxu0 %vm383_vm3, %v716_v50 }
 0x234   :  { %v667_v28 = vpop.f32.mrf.mxu3 }
 0x235   :  { %v668_v29 = vadd.f32 %v1320_v31, %v667_v28 }
 0x237   :  { %vm685_vm5 = vcmp.gt.f32.partialorder %v668_v29, 0.0  ;;  %v701_v30 = vmul.f32 0.2, %v668_v29 }
 0x239   :  { %v717_v32 = vsel %vm685_vm5, %v668_v29, %v701_v30 }
 0x23a   :  { %941 = vmatmul.msk.f32.vlgmr.msra.gmra.mxu2 %vm383_vm3, %v717_v32 }
 0x23f   :  { %v793_v34 = vpop.f32.mrf.mxu0 }
 0x240   :  { %v794_v35 = vadd.f32 %v793_v34, %v727_v33 }
 0x242   :  { %842 = vst.msk [vmem:[%s1432_s11] sm:$0xff] %vm841_vm6, %v794_v35 }
 0x247   :  { %v796_v36 = vpop.f32.mrf.mxu0 }
 0x248   :  { %v797_v22 = vadd.f32 %v796_v36, %v727_v33 }
 0x24a   :  { %843 = vst.msk [vmem:[%s1432_s11 + $0x8] sm:$0xff] %vm841_vm6, %v797_v22 }
 0x24f   :  { %v799_v31 = vpop.f32.mrf.mxu0 }
 0x250   :  { %v800_v37 = vadd.f32 %v799_v31, %v727_v33 }
 0x252   :  { %844 = vst.msk [vmem:[%s1432_s11 + $0x10] sm:$0xff] %vm841_vm6, %v800_v37 }
 0x257   :  { %v802_v38 = vpop.f32.mrf.mxu0 }
 0x258   :  { %v803_v39 = vadd.f32 %v802_v38, %v727_v33 }
 0x25a   :  { %845 = vst.msk [vmem:[%s1432_s11 + $0x18] sm:$0xff] %vm841_vm6, %v803_v39 }
 0x25f   :  { %v805_v40 = vpop.f32.mrf.mxu0 }
 0x260   :  { %v806_v41 = vadd.f32 %v805_v40, %v727_v33 }
 0x262   :  { %846 = vst.msk [vmem:[%s1432_s11 + $0x20] sm:$0xff] %vm841_vm6, %v806_v41 }
 0x267   :  { %v808_v42 = vpop.f32.mrf.mxu0 }
 0x268   :  { %v809_v43 = vadd.f32 %v808_v42, %v727_v33 }
 0x26a   :  { %847 = vst.msk [vmem:[%s1432_s11 + $0x28] sm:$0xff] %vm841_vm6, %v809_v43 }
 0x26f   :  { %v811_v44 = vpop.f32.mrf.mxu0 }
 0x270   :  { %v812_v45 = vadd.f32 %v811_v44, %v727_v33 }
 0x272   :  { %848 = vst.msk [vmem:[%s1432_s11 + $0x30] sm:$0xff] %vm841_vm6, %v812_v45 }
 0x277   :  { %v814_v46 = vpop.f32.mrf.mxu0 }
 0x278   :  { %v815_v47 = vadd.f32 %v814_v46, %v727_v33 }
 0x27a   :  { %849 = vst.msk [vmem:[%s1432_s11 + $0x38] sm:$0xff] %vm841_vm6, %v815_v47 }
 0x27f   :  { %v817_v48 = vpop.f32.mrf.mxu0 }
 0x280   :  { %v818_v49 = vadd.f32 %v817_v48, %v727_v33 }
 0x282   :  { %850 = vst.msk [vmem:[%s1432_s11 + $0x40] sm:$0xff] %vm841_vm6, %v818_v49 }
 0x287   :  { %v820_v51 = vpop.f32.mrf.mxu0 }
 0x288   :  { %v821_v52 = vadd.f32 %v820_v51, %v727_v33 }
 0x28a   :  { %851 = vst.msk [vmem:[%s1432_s11 + $0x48] sm:$0xff] %vm841_vm6, %v821_v52 }
 0x28f   :  { %v823_v53 = vpop.f32.mrf.mxu0 }
 0x290   :  { %v824_v54 = vadd.f32 %v823_v53, %v727_v33 }
 0x292   :  { %852 = vst.msk [vmem:[%s1432_s11 + $0x50] sm:$0xff] %vm841_vm6, %v824_v54 }
 0x297   :  { %v826_v55 = vpop.f32.mrf.mxu0 }
 0x298   :  { %v827_v56 = vadd.f32 %v826_v55, %v727_v33 }
 0x29a   :  { %853 = vst.msk [vmem:[%s1432_s11 + $0x58] sm:$0xff] %vm841_vm6, %v827_v56 }
 0x29f   :  { %v829_v57 = vpop.f32.mrf.mxu0 }
 0x2a0   :  { %v830_v58 = vadd.f32 %v829_v57, %v727_v33 }
 0x2a2   :  { %854 = vst.msk [vmem:[%s1432_s11 + $0x60] sm:$0xff] %vm841_vm6, %v830_v58 }
 0x2a7   :  { %v832_v59 = vpop.f32.mrf.mxu0 }
 0x2a8   :  { %v833_v60 = vadd.f32 %v832_v59, %v727_v33 }
 0x2aa   :  { %855 = vst.msk [vmem:[%s1432_s11 + $0x68] sm:$0xff] %vm841_vm6, %v833_v60 }
 0x2af   :  { %v835_v61 = vpop.f32.mrf.mxu0 }
 0x2b0   :  { %v836_v62 = vadd.f32 %v835_v61, %v727_v33 }
 0x2b2   :  { %856 = vst.msk [vmem:[%s1432_s11 + $0x70] sm:$0xff] %vm841_vm6, %v836_v62 }
 0x2bd   :  { %v838_v63 = vpop.f32.mrf.mxu2 }
 0x2be   :  { %v839_v0 = vadd.f32 %v838_v63, %v727_v33 }
 0x2c0   :  { %857 = vst.msk [vmem:[%s1432_s11 + $0x78] sm:$0xff] %vm841_vm6, %v839_v0 }

</bundles_post_ra>
